<compile_context>
chip_gen: v7x
topology: tpu7x:2x2x1
jax: 0.10.0
libtpu: 0.0.40
codegen_flags: <defaults>
</compile_context>

<pallas_src>
import functools

import jax
import jax.numpy as jnp
from jax.experimental import pallas as pl
from jax.experimental.pallas import tpu as pltpu


def _fc_kernel(x_ref, cvec_ref, w2_ref, w3_ref, wg2_ref, out_ref, *,
               hid_c, out_c_pad):
    # Orientation: rows (batch*seq) on lanes, channels on sublanes.
    #   x_ref   : (1, R)         f32  input rows, positional add already folded in
    #   cvec_ref: (8h + oc, 1)   f32  packed [w1^T; b1; b2; b3; bg2]
    #   w2_ref  : (2h, h)        bf16 Conv1d(h, 2h, 1) weight, transposed
    #   w3_ref  : (4h, 2h)       bf16 Conv1d(2h, 4h, 1) weight, transposed
    #   wg2_ref : (oc, 4h)       bf16 fused g2 weight (w6 w5 w4)^T
    #   out_ref : (oc, R)        f32
    h = hid_c
    xv = x_ref[...]                                    # (1, R)

    w1 = cvec_ref[0:h, :]                              # (h, 1)
    b1 = cvec_ref[h:2 * h, :]                          # (h, 1)
    b2 = cvec_ref[2 * h:4 * h, :]                      # (2h, 1)
    b3 = cvec_ref[4 * h:8 * h, :]                      # (4h, 1)
    bg2 = cvec_ref[8 * h:8 * h + out_c_pad, :]         # (oc, 1)

    # g1 layer 1: Conv1d(1, h, 1) + ReLU == outer product -> VPU, f32.
    h1 = jnp.maximum(w1 * xv + b1, 0.0)                # (h, R)

    # g1 layers 2/3: bf16 MXU dots with f32 accumulation; N = R fills the MXU.
    h2 = jnp.maximum(
        jnp.dot(w2_ref[...], h1.astype(jnp.bfloat16),
                preferred_element_type=jnp.float32) + b2, 0.0)      # (2h, R)
    h3 = jnp.maximum(
        jnp.dot(w3_ref[...], h2.astype(jnp.bfloat16),
                preferred_element_type=jnp.float32) + b3, 0.0)      # (4h, R)

    # g2: three activation-free 1x1 convs, pre-fused into one matmul.
    out_ref[...] = (
        jnp.dot(wg2_ref[...], h3.astype(jnp.bfloat16),
                preferred_element_type=jnp.float32) + bg2)          # (oc, R)


def init_params(key, hid_c, out_c):
    """Deterministic params: xavier_normal_ conv weights (in, out layout), zero
    biases, N(0,1) position embedding — mirrors the PyTorch __init__."""
    dims = [(1, hid_c), (hid_c, 2 * hid_c), (2 * hid_c, 4 * hid_c),
            (4 * hid_c, 2 * hid_c), (2 * hid_c, hid_c), (hid_c, out_c)]
    keys = jax.random.split(key, len(dims) + 1)
    params = {}
    for i, (cin, cout) in enumerate(dims, start=1):
        std = (2.0 / (cin + cout)) ** 0.5              # xavier_normal, kernel size 1
        params[f"w{i}"] = std * jax.random.normal(keys[i - 1], (cin, cout), jnp.float32)
        params[f"b{i}"] = jnp.zeros((1, cout), jnp.float32)
    params["emb"] = jax.random.normal(keys[-1], (out_c, out_c // 3 + 1), jnp.float32)
    return params


def fc_model_forward(x, xyz, params, hid_c, out_c, *, tile_rows=512):
    """x: (B, L) float32 (L == out_c) or (B, 1, L); xyz: (B, 3) int32 indices.

    tile_rows: rows per grid step (multiple of 128). Sweep 512-2048 for large
    B*L; VMEM is never the constraint (<1 MiB/step), per-step overhead and MXU
    fill dominate.
    """
    if x.ndim == 3:                                    # PyTorch x.dim()==3 path: (B, 1, L)
        x = x[:, 0, :]
    B, L = x.shape
    assert L == out_c, "sequence length must equal out_c (implied by X += pos_emb)"
    assert hid_c % 8 == 0, "hid_c must be a multiple of 8 for sublane-aligned slicing"

    # Glue (plain XLA): embedding lookup + view(B,1,(out_c//3+1)*3)[:, :, :out_c],
    # positional add folded into the single kernel input stream.
    emb = params["emb"][xyz]                           # (B, 3, out_c//3+1)
    pos = emb.reshape(B, -1)[:, :out_c]                # (B, out_c)
    xin = (x.astype(jnp.float32) + pos.astype(jnp.float32)).reshape(1, B * L)

    rows = B * L
    # Rows live on the lane axis -> tiles must be multiples of 128. Clamp to the
    # (128-rounded) problem size, and split single-step grids so the "parallel"
    # axis can shard across v7x's two TensorCores when there is enough work.
    tr = min(tile_rows, max(128, pl.cdiv(rows, 128) * 128))
    tr = max(128, (tr // 128) * 128)
    if pl.cdiv(rows, tr) < 2 and tr >= 256:
        tr = max(128, pl.cdiv(pl.cdiv(rows, 2), 128) * 128)
    rows_pad = pl.cdiv(rows, tr) * tr
    if rows_pad != rows:
        xin = jnp.pad(xin, ((0, 0), (0, rows_pad - rows)))

    # Transpose weights once so channels sit on sublanes; cast matmul weights to
    # bf16 (single MXU pass, f32 accumulation in the kernel).
    w1t = params["w1"].T                               # (h, 1)  stays f32 (VPU layer)
    w2t = params["w2"].T.astype(jnp.bfloat16)          # (2h, h)
    w3t = params["w3"].T.astype(jnp.bfloat16)          # (4h, 2h)

    # Fuse the activation-free g2 stack: W = w4 w5 w6, b = b4 w5 w6 + b5 w6 + b6.
    w4, w5, w6 = params["w4"], params["w5"], params["w6"]
    b4, b5, b6 = params["b4"], params["b5"], params["b6"]
    wg2 = w4 @ w5 @ w6                                 # (4h, out_c)
    bg2 = b4 @ w5 @ w6 + b5 @ w6 + b6                  # (1, out_c)

    # Pad out_c only to a sublane multiple (8) — no 128-lane output slab anymore.
    out_c_pad = pl.cdiv(out_c, 8) * 8
    wg2t = jnp.pad(wg2.T, ((0, out_c_pad - out_c), (0, 0))).astype(jnp.bfloat16)  # (oc, 4h)
    bg2t = jnp.pad(bg2.T, ((0, out_c_pad - out_c), (0, 0)))                        # (oc, 1)

    # Pack all (C, 1) column constants into a single resident stream.
    cvec = jnp.concatenate(
        [w1t, params["b1"].T, params["b2"].T, params["b3"].T, bg2t],
        axis=0).astype(jnp.float32)                    # (8h + oc, 1)

    consts = [cvec, w2t, w3t, wg2t]
    in_specs = [pl.BlockSpec((1, tr), lambda r: (0, r))]
    for c in consts:
        in_specs.append(pl.BlockSpec(c.shape, lambda r: (0, 0)))   # resident across grid

    kernel = functools.partial(_fc_kernel, hid_c=hid_c, out_c_pad=out_c_pad)

    out = pl.pallas_call(
        kernel,
        out_shape=jax.ShapeDtypeStruct((out_c_pad, rows_pad), jnp.float32),
        grid_spec=pltpu.PrefetchScalarGridSpec(
            num_scalar_prefetch=0,
            grid=(rows_pad // tr,),
            in_specs=in_specs,
            out_specs=pl.BlockSpec((out_c_pad, tr), lambda r: (0, r)),
        ),
        compiler_params=pltpu.CompilerParams(
            dimension_semantics=("parallel",)),        # shards across v7x's 2 TCs
    )(xin, *consts)

    # (oc, rows_pad) -> drop padding, restore PyTorch's (B, L, out_c) layout
    # (g2(h).transpose(1, 2).contiguous()); this slice/transpose now touches only
    # out_c * rows elements instead of a 128-lane padded slab.
    return out[:out_c, :rows].T.reshape(B, L, out_c)


def _reference_forward(x, xyz, params, hid_c, out_c):
    """Pure-JAX f32 reference mirroring the PyTorch forward (for sanity check)."""
    B, L = x.shape
    emb = params["emb"][xyz]
    pos = emb.reshape(B, -1)[:, :out_c]
    X = x + pos                                        # (B, L)
    h = X[..., None]                                   # (B, L, 1)
    h = jnp.maximum(h @ params["w1"] + params["b1"], 0.0)
    h = jnp.maximum(h @ params["w2"] + params["b2"], 0.0)
    h = jnp.maximum(h @ params["w3"] + params["b3"], 0.0)
    h = h @ params["w4"] + params["b4"]
    h = h @ params["w5"] + params["b5"]
    h = h @ params["w6"] + params["b6"]
    return h                                           # (B, L, out_c)


if __name__ == "__main__":
    hid_c, out_c = 32, 16
    B, L = 2, out_c

    key = jax.random.PRNGKey(0)
    k_params, k_x, k_xyz = jax.random.split(key, 3)

    params = init_params(k_params, hid_c, out_c)
    x = jax.random.normal(k_x, (B, L), jnp.float32)                      # x.dim() == 2 path
    xyz = jax.random.randint(k_xyz, (B, 3), 0, out_c, dtype=jnp.int32)   # embedding indices

    log_alpha = fc_model_forward(x, xyz, params, hid_c, out_c)
    log_alpha = jax.block_until_ready(log_alpha)

    ref = _reference_forward(x, xyz, params, hid_c, out_c)
    assert log_alpha.shape == (B, L, out_c)
    # Tolerance loosened vs the f32 reference because matmul weights/activations
    # are fed to the MXU in bf16 (f32 accumulation) and g2 is pre-fused.
    assert jnp.allclose(log_alpha, ref, atol=2e-2, rtol=2e-2), (
        float(jnp.max(jnp.abs(log_alpha - ref))))

    print("KERNEL_OK")
</pallas_src>

<mosaic_0001>
module attributes {stable_mosaic.version = 11 : i64} {
  func.func @_fc_kernel(%arg0: i32, %arg1: memref<1x128xf32, #tpu.memory_space<vmem>>, %arg2: memref<272x1xf32, #tpu.memory_space<vmem>>, %arg3: memref<64x32xbf16, #tpu.memory_space<vmem>>, %arg4: memref<128x64xbf16, #tpu.memory_space<vmem>>, %arg5: memref<16x128xbf16, #tpu.memory_space<vmem>>, %arg6: memref<16x128xf32, #tpu.memory_space<vmem>>) attributes {dimension_semantics = [#tpu.dimension_semantics<parallel>], iteration_bounds = array<i64: 1>, scalar_prefetch = 0 : i64, scratch_operands = 0 : i64, tpu.core_type = #tpu.core_type<tc>, window_params = [{transform_indices = @transform_0, window_bounds = array<i64: 1, 128>}, {pipeline_mode = #tpu.pipeline_mode<synchronous>, transform_indices = @transform_1, window_bounds = array<i64: 272, 1>}, {pipeline_mode = #tpu.pipeline_mode<synchronous>, transform_indices = @transform_2, window_bounds = array<i64: 64, 32>}, {pipeline_mode = #tpu.pipeline_mode<synchronous>, transform_indices = @transform_3, window_bounds = array<i64: 128, 64>}, {pipeline_mode = #tpu.pipeline_mode<synchronous>, transform_indices = @transform_4, window_bounds = array<i64: 16, 128>}, {transform_indices = @transform_5, window_bounds = array<i64: 16, 128>}]} {
    %c0 = arith.constant 0 : index
    %c0_0 = arith.constant 0 : index
    %0 = vector.load %arg1[%c0, %c0_0] : memref<1x128xf32, #tpu.memory_space<vmem>>, vector<1x128xf32>
    %c0_1 = arith.constant 0 : index
    %c0_2 = arith.constant 0 : index
    %1 = vector.load %arg2[%c0_1, %c0_2] : memref<272x1xf32, #tpu.memory_space<vmem>>, vector<32x1xf32>
    %c32 = arith.constant 32 : index
    %c0_3 = arith.constant 0 : index
    %2 = vector.load %arg2[%c32, %c0_3] : memref<272x1xf32, #tpu.memory_space<vmem>>, vector<32x1xf32>
    %c64 = arith.constant 64 : index
    %c0_4 = arith.constant 0 : index
    %3 = vector.load %arg2[%c64, %c0_4] : memref<272x1xf32, #tpu.memory_space<vmem>>, vector<64x1xf32>
    %c128 = arith.constant 128 : index
    %c0_5 = arith.constant 0 : index
    %4 = vector.load %arg2[%c128, %c0_5] : memref<272x1xf32, #tpu.memory_space<vmem>>, vector<128x1xf32>
    %c256 = arith.constant 256 : index
    %c0_6 = arith.constant 0 : index
    %5 = vector.load %arg2[%c256, %c0_6] : memref<272x1xf32, #tpu.memory_space<vmem>>, vector<16x1xf32>
    %6 = vector.broadcast %1 : vector<32x1xf32> to vector<32x128xf32>
    %7 = vector.broadcast %0 : vector<1x128xf32> to vector<32x128xf32>
    %8 = arith.mulf %6, %7 : vector<32x128xf32>
    %9 = vector.broadcast %2 : vector<32x1xf32> to vector<32x128xf32>
    %10 = arith.addf %8, %9 : vector<32x128xf32>
    %cst = arith.constant 0.000000e+00 : f32
    %11 = vector.broadcast %cst : f32 to vector<32x128xf32>
    %12 = arith.maximumf %10, %11 : vector<32x128xf32>
    %c0_7 = arith.constant 0 : index
    %c0_8 = arith.constant 0 : index
    %13 = vector.load %arg3[%c0_7, %c0_8] : memref<64x32xbf16, #tpu.memory_space<vmem>>, vector<64x32xbf16>
    %14 = arith.truncf %12 : vector<32x128xf32> to vector<32x128xbf16>
    %cst_9 = arith.constant dense<0.000000e+00> : vector<64x128xf32>
    %15 = tpu.matmul %13, %14, %cst_9 {dimension_numbers = #tpu.dot_dimension_numbers<[1], [0], [0], [1], [0, 0, 1, 1], [], []>} : vector<64x32xbf16>, vector<32x128xbf16>, vector<64x128xf32> -> vector<64x128xf32>
    %16 = vector.broadcast %3 : vector<64x1xf32> to vector<64x128xf32>
    %17 = arith.addf %15, %16 : vector<64x128xf32>
    %cst_10 = arith.constant 0.000000e+00 : f32
    %18 = vector.broadcast %cst_10 : f32 to vector<64x128xf32>
    %19 = arith.maximumf %17, %18 : vector<64x128xf32>
    %c0_11 = arith.constant 0 : index
    %c0_12 = arith.constant 0 : index
    %20 = vector.load %arg4[%c0_11, %c0_12] : memref<128x64xbf16, #tpu.memory_space<vmem>>, vector<128x64xbf16>
    %21 = arith.truncf %19 : vector<64x128xf32> to vector<64x128xbf16>
    %cst_13 = arith.constant dense<0.000000e+00> : vector<128x128xf32>
    %22 = tpu.matmul %20, %21, %cst_13 {dimension_numbers = #tpu.dot_dimension_numbers<[1], [0], [0], [1], [0, 0, 1, 1], [], []>} : vector<128x64xbf16>, vector<64x128xbf16>, vector<128x128xf32> -> vector<128x128xf32>
    %23 = vector.broadcast %4 : vector<128x1xf32> to vector<128x128xf32>
    %24 = arith.addf %22, %23 : vector<128x128xf32>
    %cst_14 = arith.constant 0.000000e+00 : f32
    %25 = vector.broadcast %cst_14 : f32 to vector<128x128xf32>
    %26 = arith.maximumf %24, %25 : vector<128x128xf32>
    %c0_15 = arith.constant 0 : index
    %c0_16 = arith.constant 0 : index
    %27 = vector.load %arg5[%c0_15, %c0_16] : memref<16x128xbf16, #tpu.memory_space<vmem>>, vector<16x128xbf16>
    %28 = arith.truncf %26 : vector<128x128xf32> to vector<128x128xbf16>
    %cst_17 = arith.constant dense<0.000000e+00> : vector<16x128xf32>
    %29 = tpu.matmul %27, %28, %cst_17 {dimension_numbers = #tpu.dot_dimension_numbers<[1], [0], [0], [1], [0, 0, 1, 1], [], []>} : vector<16x128xbf16>, vector<128x128xbf16>, vector<16x128xf32> -> vector<16x128xf32>
    %30 = vector.broadcast %5 : vector<16x1xf32> to vector<16x128xf32>
    %31 = arith.addf %29, %30 : vector<16x128xf32>
    %c0_18 = arith.constant 0 : index
    %c0_19 = arith.constant 0 : index
    %32 = vector.load %arg6[%c0_18, %c0_19] : memref<16x128xf32, #tpu.memory_space<vmem>>, vector<16x128xf32>
    tpu.vector_store %arg6[%c0_18, %c0_19], %31 {strides = array<i32>} : memref<16x128xf32, #tpu.memory_space<vmem>>, vector<16x128xf32>,
    return
  }
  func.func @transform_0(%arg0: i32) -> (i32, i32) {
    %c0_i32 = arith.constant 0 : i32
    %c0_i32_0 = arith.constant 0 : i32
    return %c0_i32, %arg0 : i32, i32
  }
  func.func @transform_1(%arg0: i32) -> (i32, i32) {
    %c0_i32 = arith.constant 0 : i32
    %c0_i32_0 = arith.constant 0 : i32
    %c0_i32_1 = arith.constant 0 : i32
    return %c0_i32, %c0_i32_0 : i32, i32
  }
  func.func @transform_2(%arg0: i32) -> (i32, i32) {
    %c0_i32 = arith.constant 0 : i32
    %c0_i32_0 = arith.constant 0 : i32
    %c0_i32_1 = arith.constant 0 : i32
    return %c0_i32, %c0_i32_0 : i32, i32
  }
  func.func @transform_3(%arg0: i32) -> (i32, i32) {
    %c0_i32 = arith.constant 0 : i32
    %c0_i32_0 = arith.constant 0 : i32
    %c0_i32_1 = arith.constant 0 : i32
    return %c0_i32, %c0_i32_0 : i32, i32
  }
  func.func @transform_4(%arg0: i32) -> (i32, i32) {
    %c0_i32 = arith.constant 0 : i32
    %c0_i32_0 = arith.constant 0 : i32
    %c0_i32_1 = arith.constant 0 : i32
    return %c0_i32, %c0_i32_0 : i32, i32
  }
  func.func @transform_5(%arg0: i32) -> (i32, i32) {
    %c0_i32 = arith.constant 0 : i32
    %c0_i32_0 = arith.constant 0 : i32
    return %c0_i32, %arg0 : i32, i32
  }
}

</mosaic_0001>

<bundles_post_ra>
// kernel: tpu_custom_call.1
= control target key start
LH: loop header
LB: loop body
LE: loop exit
PB: predicated region body
PF: predicated region fallthrough
CT: control target
= control target key end

     0   :  { %v788_v2 = vmov 0   ;;  %s1001_s0 = inlined_call_operand.vmem [shape: f32[1,128], index: 0, kind: input, shape index: {}]   ;;  %s1002_s1 = inlined_call_operand.vmem [shape: f32[272,1], index: 1, kind: input, shape index: {}]   ;;  %s1003_s2 = inlined_call_operand.vmem [shape: bf16[64,32], index: 2, kind: input, shape index: {}]   ;;  %s1004_s3 = inlined_call_operand.vmem [shape: bf16[128,64], index: 3, kind: input, shape index: {}]   ;;  %s1005_s4 = inlined_call_operand.vmem [shape: bf16[16,128], index: 4, kind: input, shape index: {}]   ;;  %s1006_s5 = inlined_call_operand.hbm [shape: f32[16,128], index: 5, kind: output, shape index: {}]  }
   0x1   :  { %v27_v0 = vld [vmem:[%s1002_s1 + $0x20] sm:$0xff]  ;;  %750 = vset.pattern.permute.xlu1 %v788_v2  ;;  %749 = vset.pattern.permute.xlu0 %v788_v2  ;;  %v28_v3 = vld [vmem:[%s1002_s1 + $0x28] sm:$0xff]  ;;  %v26_v5 = vld [vmem:[%s1002_s1 + $0x18] sm:$0xff] }
   0x2   :  { %v23_v1 = vld [vmem:[%s1002_s1] sm:$0xff]  ;;  %89 = vperm.xlu1 %750, %v27_v0   ;;  %v24_v4 = vld [vmem:[%s1002_s1 + $0x8] sm:$0xff]  ;;  %v25_v6 = vld [vmem:[%s1002_s1 + $0x10] sm:$0xff] }
   0x3   :  { %59 = vperm.xlu0 %749, %v23_v1   ;;  %v30_v7 = vld [vmem:[%s1002_s1 + $0x38] sm:$0xff]  ;;  %v29_v8 = vld [vmem:[%s1002_s1 + $0x30] sm:$0xff]  ;;  %v32_v9 = vld [vmem:[%s1002_s1 + $0x48] sm:$0xff] }
   0x4   :  { %v31_v10 = vld [vmem:[%s1002_s1 + $0x40] sm:$0xff]  ;;  %v34_v11 = vld [vmem:[%s1002_s1 + $0x58] sm:$0xff]  ;;  %v33_v12 = vld [vmem:[%s1002_s1 + $0x50] sm:$0xff] }
   0x6   :  { %94 = vperm.xlu1 %750, %v28_v3  }
   0x7   :  { %64 = vperm.xlu0 %749, %v24_v4  }
   0xa   :  { %74 = vperm.xlu1 %750, %v26_v5  }
   0xb   :  { %69 = vperm.xlu0 %749, %v25_v6  }
   0xe   :  { %104 = vperm.xlu1 %750, %v30_v7  }
   0xf   :  { %99 = vperm.xlu0 %749, %v29_v8  }
  0x12   :  { %132 = vperm.xlu1 %750, %v32_v9  }
  0x13   :  { %127 = vperm.xlu0 %749, %v31_v10  }
  0x14   :  { %10 = vsyncpa [#allocation3], 0  ;;  %v751_v13 = vld [vmem:[%s1003_s2] sm:$0xff]   ;;  %vm185_vm0 = vcmask 261120   ;;  %v36_v14 = vld [vmem:[%s1002_s1 + $0x68] sm:$0xff]  ;;  %vm411_vm1 = vcmask 523264  }
  0x15   :  { %v35_v15 = vld [vmem:[%s1002_s1 + $0x60] sm:$0xff]  ;;  %691 = vmatprep.mubr.msk.bf16.mxu0 %vm185_vm0, %v751_v13  ;;  %v38_v16 = vld [vmem:[%s1002_s1 + $0x78] sm:$0xff]  ;;  %v37_v17 = vld [vmem:[%s1002_s1 + $0x70] sm:$0xff]  ;;  %vm790_vm2 = vmmov 0   ;;  %s791_s10 = smov [#allocation2]  }
  0x16   :  { %142 = vperm.xlu1 %750, %v34_v11   ;;  %v40_v18 = vld [vmem:[%s1002_s1 + $0x88] sm:$0xff]  ;;  %v39_v19 = vld [vmem:[%s1002_s1 + $0x80] sm:$0xff]  ;;  %v42_v20 = vld [vmem:[%s1002_s1 + $0x98] sm:$0xff]  ;;  %s623_s11 = sshll.u32 %s791_s10, 4  ;;  %s624_s11 = int_to_ptr.vmem [resolvable:$true] %s623_s11 }
  0x17   :  { %137 = vperm.xlu0 %749, %v33_v12   ;;  %v41_v21 = vld [vmem:[%s1002_s1 + $0x90] sm:$0xff]  ;;  %v44_v22 = vld [vmem:[%s1002_s1 + $0xa8] sm:$0xff]  ;;  %v43_v23 = vld [vmem:[%s1002_s1 + $0xa0] sm:$0xff]  ;;  %s764_s12 = scalar_lea.vmem %s624_s11, 256  ;;  %p769_p1 = scmp.lt.s32.totalorder %s624_s11, %s624_s11 }
  0x18   :  { %v46_v24 = vld [vmem:[%s1002_s1 + $0xb8] sm:$0xff]  ;;  %v45_v25 = vld [vmem:[%s1002_s1 + $0xb0] sm:$0xff]  ;;  %v48_v26 = vld [vmem:[%s1002_s1 + $0xc8] sm:$0xff]  ;;  %p765_p0 = scmp.ne.s32.totalorder %s624_s11, %s764_s12  ;;  %p770_p2 = scmp.lt.s32.totalorder %s764_s12, %s764_s12 }
  0x19   :  { %v47_v27 = vld [vmem:[%s1002_s1 + $0xc0] sm:$0xff]  ;;  %v50_v28 = vld [vmem:[%s1002_s1 + $0xd8] sm:$0xff]  ;;  %v49_v29 = vld [vmem:[%s1002_s1 + $0xd0] sm:$0xff] }
  0x1a   :  { %152 = vperm.xlu1 %750, %v36_v14   ;;  %v52_v30 = vld [vmem:[%s1002_s1 + $0xe8] sm:$0xff]  ;;  %v51_v31 = vld [vmem:[%s1002_s1 + $0xe0] sm:$0xff]  ;;  %v54_v32 = vld [vmem:[%s1002_s1 + $0xf8] sm:$0xff]  ;;  %p771_p3 = por %p770_p2, %p769_p1 }
  0x1b   :  { %147 = vperm.xlu0 %749, %v35_v15   ;;  %v53_v33 = vld [vmem:[%s1002_s1 + $0xf0] sm:$0xff]  ;;  %v56_v34 = vld [vmem:[%s1002_s1 + $0x108] sm:$0xff]  ;;  %v55_v35 = vld [vmem:[%s1002_s1 + $0x100] sm:$0xff] }
  0x1c   :  { %v634_v36 = vld [vmem:[%s1001_s0] ss:$0 sm:$0xff]  ;;  %v752_v59 = vld [vmem:[%s1003_s2 + $0x8] sm:$0xff]   ;;  %v753_v60 = vld [vmem:[%s1003_s2 + $0x10] sm:$0xff]   ;;  %p772_p4 = pnand %p771_p3, %p765_p0 }
  0x1d   :  { %v754_v61 = vld [vmem:[%s1003_s2 + $0x18] sm:$0xff]   ;;  %v755_v62 = vld [vmem:[%s1004_s3] sm:$0xff]  }
  0x1e   :  { %162 = vperm.xlu1 %750, %v38_v16   ;;  %707 = vmatprep.mubr.msk.bf16.mxu1 %vm411_vm1, %v755_v62 }
  0x1f   :  { %157 = vperm.xlu0 %749, %v37_v17  }
  0x22   :  { %298 = vperm.xlu1 %750, %v40_v18  }
  0x23   :  { %293 = vperm.xlu0 %749, %v39_v19  }
  0x26   :  { %308 = vperm.xlu1 %750, %v42_v20  }
  0x27   :  { %303 = vperm.xlu0 %749, %v41_v21  }
  0x2a   :  { %318 = vperm.xlu1 %750, %v44_v22  }
  0x2b   :  { %313 = vperm.xlu0 %749, %v43_v23  }
  0x2e   :  { %328 = vperm.xlu1 %750, %v46_v24  }
  0x2f   :  { %323 = vperm.xlu0 %749, %v45_v25  }
  0x32   :  { %338 = vperm.xlu1 %750, %v48_v26  }
  0x33   :  { %333 = vperm.xlu0 %749, %v47_v27  }
  0x36   :  { %348 = vperm.xlu1 %750, %v50_v28  }
  0x37   :  { %343 = vperm.xlu0 %749, %v49_v29  }
  0x3a   :  { %358 = vperm.xlu1 %750, %v52_v30  }
  0x3b   :  { %353 = vperm.xlu0 %749, %v51_v31  }
  0x3e   :  { %368 = vperm.xlu1 %750, %v54_v32  }
  0x3f   :  { %363 = vperm.xlu0 %749, %v53_v33  }
  0x42   :  { %566 = vperm.xlu1 %750, %v56_v34  }
  0x43   :  { %561 = vperm.xlu0 %749, %v55_v35   ;;  %v756_v35 = vld [vmem:[%s1004_s3 + $0x8] sm:$0xff]  }
  0x81   :  { %v90_v37 = vpop.permute.xlu1 %89 }
  0x82   :  { %v60_v38 = vpop.permute.xlu0 %59 }
  0x83   :  { %v83_v39 = vmul.f32 %v634_v36, %v60_v38  ;;  %v759_v38 = vld [vmem:[%s1004_s3 + $0x20] sm:$0xff]  }
  0x85   :  { %v95_v40 = vpop.permute.xlu1 %94  ;;  %v107_v42 = vadd.f32 %v90_v37, %v83_v39  ;;  %v758_v37 = vld [vmem:[%s1004_s3 + $0x18] sm:$0xff]   ;;  %v760_v39 = vld [vmem:[%s1004_s3 + $0x28] sm:$0xff]  }
  0x86   :  { %v65_v41 = vpop.permute.xlu0 %64 }
  0x87   :  { %v84_v43 = vmul.f32 %v634_v36, %v65_v41  ;;  %v111_v47 = vmax.f32 %v107_v42, 0.0  ;;  %v762_v41 = vld [vmem:[%s1004_s3 + $0x38] sm:$0xff]   ;;  %v789_v42 = vmov 0.0  }
  0x89   :  { %v108_v44 = vadd.f32 %v95_v40, %v84_v43  ;;  %v75_v45 = vpop.permute.xlu1 %74  ;;  %v761_v40 = vld [vmem:[%s1004_s3 + $0x30] sm:$0xff]  }
  0x8a   :  { %v70_v46 = vpop.permute.xlu0 %69  ;;  %v86_v49 = vmul.f32 %v634_v36, %v75_v45 }
  0x8b   :  { %v112_v48 = vmax.f32 %v108_v44, 0.0  ;;  %v85_v50 = vmul.f32 %v634_v36, %v70_v46  ;;  %v757_v36 = vld [vmem:[%s1004_s3 + $0x10] sm:$0xff]  }
  0x8d   :  { %v123_v51 = vpack.c.bf16 %v112_v48, %v111_v47  ;;  %v105_v52 = vpop.permute.xlu1 %104 }
  0x8e   :  { %v100_v53 = vpop.permute.xlu0 %99  ;;  %v110_v54 = vadd.f32 %v105_v52, %v86_v49 }
  0x8f   :  { %v109_v55 = vadd.f32 %v100_v53, %v85_v50  ;;  %687 = vmatprep.subr.bf16.mxu0 %v123_v51 }
  0x90   :  { %688 = vmatpush3.bf16.msra.mxu0 %v123_v51  ;;  %v114_v56 = vmax.f32 %v110_v54, 0.0 }
  0x91   :  { %v113_v57 = vmax.f32 %v109_v55, 0.0  ;;  %v133_v0 = vpop.permute.xlu1 %132 }
  0x92   :  { %v128_v63 = vpop.permute.xlu0 %127 }
  0x93   :  { %v124_v58 = vpack.c.bf16 %v114_v56, %v113_v57 }
  0x95   :  { %689 = vmatprep.subr.bf16.mxu0 %v124_v58  ;;  %v143_v2 = vpop.permute.xlu1 %142 }
  0x96   :  { %690 = vmatpush3.bf16.msra.mxu0 %v124_v58  ;;  %v138_v1 = vpop.permute.xlu0 %137 }
  0x97   :  { %723 = vmatprep.subr.bf16.mxu0 %v789_v42 }
  0x99   :  { %692 = vmatmul.mubr.msk.bf16.vlgmr.msra.gmra.mrb[0].mxu0 %vm185_vm0, %v752_v59  ;;  %v153_v11 = vpop.permute.xlu1 %152 }
  0x9a   :  { %695 = vmatprep.mubr.msk.bf16.mxu0 %vm185_vm0, %v753_v60  ;;  %v148_v6 = vpop.permute.xlu0 %147 }
  0x9d   :  { %v163_v23 = vpop.permute.xlu1 %162 }
  0x9e   :  { %v158_v18 = vpop.permute.xlu0 %157 }
  0xa1   :  { %696 = vmatmul.mubr.msk.bf16.gmra.mrb[4].mxu0 %vm185_vm0, %v754_v61  ;;  %v299_v44 = vpop.permute.xlu1 %298 }
  0xa2   :  { %739 = vmatprep.mubr.msk.bf16.mxu0 %vm790_vm2, %v789_v42  ;;  %v294_v43 = vpop.permute.xlu0 %293 }
  0xa5   :  { %v309_v46 = vpop.permute.xlu1 %308 }
  0xa6   :  { %v304_v45 = vpop.permute.xlu0 %303 }
  0xa9   :  { %v319_v48 = vpop.permute.xlu1 %318 }
  0xaa   :  { %v314_v47 = vpop.permute.xlu0 %313 }
  0xad   :  { %v329_v53 = vpop.permute.xlu1 %328 }
  0xae   :  { %v324_v49 = vpop.permute.xlu0 %323 }
  0xb2   :  { %v334_v61 = vpop.permute.xlu0 %333 }
 0x16c   :  { %v693_v3 = vpop.f32.mrb[0].mxu0 }
 0x16d   :  { %v241_v4 = vadd.f32 %v693_v3, %v138_v1  ;;  %v232_v5 = vpop.f32.mrb[1].mxu0  ;;  %v339_v1 = vpop.permute.xlu1 %338 }
 0x16e   :  { %v233_v7 = vadd.f32 %v232_v5, %v128_v63  ;;  %v694_v8 = vpop.f32.mrb[2].mxu0 }
 0x16f   :  { %v244_v9 = vadd.f32 %v694_v8, %v143_v2  ;;  %v235_v10 = vpop.f32.mrb[3].mxu0  ;;  %v265_v13 = vmax.f32 %v241_v4, 0.0 }
 0x170   :  { %v236_v12 = vadd.f32 %v235_v10, %v133_v0  ;;  %v263_v15 = vmax.f32 %v233_v7, 0.0  ;;  %v344_v10 = vpop.permute.xlu0 %343 }
 0x171   :  { %v266_v14 = vmax.f32 %v244_v9, 0.0 }
 0x172   :  { %v264_v16 = vmax.f32 %v236_v12, 0.0 }
 0x173   :  { %v288_v17 = vpack.c.bf16 %v266_v14, %v265_v13  ;;  %v349_v14 = vpop.permute.xlu1 %348 }
 0x174   :  { %v697_v19 = vpop.f32.mrb[4].mxu0  ;;  %v287_v20 = vpack.c.bf16 %v264_v16, %v263_v15 }
 0x175   :  { %v257_v21 = vadd.f32 %v697_v19, %v158_v18  ;;  %v248_v22 = vpop.f32.mrb[5].mxu0 }
 0x176   :  { %v249_v24 = vadd.f32 %v248_v22, %v148_v6  ;;  %v698_v25 = vpop.f32.mrb[6].mxu0  ;;  %699 = vmatprep.subr.bf16.mxu1 %v287_v20  ;;  %v354_v22 = vpop.permute.xlu0 %353 }
 0x177   :  { %v260_v26 = vadd.f32 %v698_v25, %v163_v23  ;;  %v251_v27 = vpop.f32.mrb[7].mxu0  ;;  %700 = vmatpush3.bf16.msra.mxu1 %v287_v20  ;;  %v269_v29 = vmax.f32 %v257_v21, 0.0 }
 0x178   :  { %v252_v28 = vadd.f32 %v251_v27, %v153_v11  ;;  %701 = vmatprep.subr.bf16.mxu1 %v288_v17  ;;  %v267_v31 = vmax.f32 %v249_v24, 0.0  ;;  %v359_v27 = vpop.permute.xlu1 %358 }
 0x179   :  { %v270_v30 = vmax.f32 %v260_v26, 0.0 }
 0x17a   :  { %v268_v32 = vmax.f32 %v252_v28, 0.0 }
 0x17b   :  { %v290_v33 = vpack.c.bf16 %v270_v30, %v269_v29  ;;  %702 = vmatpush3.bf16.msra.mxu1 %v288_v17 }
 0x17c   :  { %v289_v34 = vpack.c.bf16 %v268_v32, %v267_v31 }
 0x17e   :  { %703 = vmatprep.subr.bf16.mxu1 %v289_v34 }
 0x17f   :  { %704 = vmatpush3.bf16.msra.mxu1 %v289_v34  ;;  %v364_v34 = vpop.permute.xlu0 %363 }
 0x180   :  { %705 = vmatprep.subr.bf16.mxu1 %v290_v33 }
 0x183   :  { %706 = vmatpush3.bf16.msra.mxu1 %v290_v33 }
 0x186   :  { %708 = vmatmul.mubr.msk.bf16.vlgmr.msra.gmra.mrb[0].mxu1 %vm411_vm1, %v756_v35 }
 0x187   :  { %711 = vmatprep.mubr.msk.bf16.mxu1 %vm411_vm1, %v757_v36 }
 0x18e   :  { %712 = vmatmul.mubr.msk.bf16.gmra.mrb[4].mxu1 %vm411_vm1, %v758_v37 }
 0x18f   :  { %715 = vmatprep.mubr.msk.bf16.mxu1 %vm411_vm1, %v759_v38 }
 0x196   :  { %716 = vmatmul.mubr.msk.bf16.gmra.mrb[8].mxu1 %vm411_vm1, %v760_v39  ;;  %v369_v39 = vpop.permute.xlu1 %368 }
 0x197   :  { %719 = vmatprep.mubr.msk.bf16.mxu1 %vm411_vm1, %v761_v40 }
 0x19e   :  { %720 = vmatmul.mubr.msk.bf16.gmra.mrb[12].mxu1 %vm411_vm1, %v762_v41 }
 0x259   :  { %v709_v50 = vpop.f32.mrb[0].mxu1 }
 0x25a   :  { %v479_v51 = vadd.f32 %v709_v50, %v304_v45  ;;  %v470_v52 = vpop.f32.mrb[1].mxu1 }
 0x25b   :  { %v471_v54 = vadd.f32 %v470_v52, %v294_v43  ;;  %v710_v55 = vpop.f32.mrb[2].mxu1  ;;  %v763_v52 = vld [vmem:[%s1005_s4] sm:$0xff]  }
 0x25c   :  { %v482_v56 = vadd.f32 %v710_v55, %v309_v46  ;;  %v473_v57 = vpop.f32.mrb[3].mxu1  ;;  %v535_v59 = vmax.f32 %v479_v51, 0.0 }
 0x25d   :  { %v474_v58 = vadd.f32 %v473_v57, %v299_v44  ;;  %v533_v62 = vmax.f32 %v471_v54, 0.0  ;;  %v567_v57 = vpop.permute.xlu1 %566 }
 0x25e   :  { %v536_v60 = vmax.f32 %v482_v56, 0.0 }
 0x25f   :  { %v534_v63 = vmax.f32 %v474_v58, 0.0 }
 0x260   :  { %v552_v0 = vpack.c.bf16 %v536_v60, %v535_v59 }
 0x261   :  { %v551_v2 = vpack.c.bf16 %v534_v63, %v533_v62  ;;  %v713_v3 = vpop.f32.mrb[4].mxu1 }
 0x262   :  { %v495_v4 = vadd.f32 %v713_v3, %v324_v49  ;;  %v486_v5 = vpop.f32.mrb[5].mxu1 }
 0x263   :  { %v487_v6 = vadd.f32 %v486_v5, %v314_v47  ;;  %v714_v7 = vpop.f32.mrb[6].mxu1  ;;  %724 = vmatpush3.bf16.msra.mxu0 %v551_v2 }
 0x264   :  { %v498_v8 = vadd.f32 %v714_v7, %v329_v53  ;;  %v489_v9 = vpop.f32.mrb[7].mxu1  ;;  %725 = vmatprep.subr.bf16.mxu0 %v789_v42  ;;  %v539_v12 = vmax.f32 %v495_v4, 0.0  ;;  %v562_v53 = vpop.permute.xlu0 %561 }
 0x265   :  { %v490_v11 = vadd.f32 %v489_v9, %v319_v48  ;;  %v537_v15 = vmax.f32 %v487_v6, 0.0 }
 0x266   :  { %v540_v13 = vmax.f32 %v498_v8, 0.0 }
 0x267   :  { %v538_v16 = vmax.f32 %v490_v11, 0.0  ;;  %726 = vmatpush3.bf16.msra.mxu0 %v552_v0 }
 0x268   :  { %v554_v17 = vpack.c.bf16 %v540_v13, %v539_v12  ;;  %727 = vmatprep.subr.bf16.mxu0 %v789_v42 }
 0x269   :  { %v553_v18 = vpack.c.bf16 %v538_v16, %v537_v15  ;;  %v717_v19 = vpop.f32.mrb[8].mxu1 }
 0x26a   :  { %v511_v20 = vadd.f32 %v717_v19, %v344_v10  ;;  %v502_v21 = vpop.f32.mrb[9].mxu1 }
 0x26b   :  { %v503_v23 = vadd.f32 %v502_v21, %v334_v61  ;;  %v718_v24 = vpop.f32.mrb[10].mxu1  ;;  %728 = vmatpush3.bf16.msra.mxu0 %v553_v18 }
 0x26c   :  { %v514_v25 = vadd.f32 %v718_v24, %v349_v14  ;;  %v505_v26 = vpop.f32.mrb[11].mxu1  ;;  %729 = vmatprep.subr.bf16.mxu0 %v789_v42  ;;  %v543_v29 = vmax.f32 %v511_v20, 0.0 }
 0x26d   :  { %v506_v28 = vadd.f32 %v505_v26, %v339_v1  ;;  %v541_v31 = vmax.f32 %v503_v23, 0.0 }
 0x26e   :  { %v544_v30 = vmax.f32 %v514_v25, 0.0 }
 0x26f   :  { %v542_v32 = vmax.f32 %v506_v28, 0.0  ;;  %730 = vmatpush3.bf16.msra.mxu0 %v554_v17 }
 0x270   :  { %v556_v33 = vpack.c.bf16 %v544_v30, %v543_v29  ;;  %731 = vmatprep.subr.bf16.mxu0 %v789_v42 }
 0x271   :  { %v555_v35 = vpack.c.bf16 %v542_v32, %v541_v31  ;;  %v721_v36 = vpop.f32.mrb[12].mxu1 }
 0x272   :  { %v527_v37 = vadd.f32 %v721_v36, %v364_v34  ;;  %v518_v38 = vpop.f32.mrb[13].mxu1 }
 0x273   :  { %v519_v40 = vadd.f32 %v518_v38, %v354_v22  ;;  %v722_v41 = vpop.f32.mrb[14].mxu1  ;;  %732 = vmatpush3.bf16.msra.mxu0 %v555_v35 }
 0x274   :  { %v530_v43 = vadd.f32 %v722_v41, %v369_v39  ;;  %v521_v44 = vpop.f32.mrb[15].mxu1  ;;  %733 = vmatprep.subr.bf16.mxu0 %v789_v42  ;;  %v547_v46 = vmax.f32 %v527_v37, 0.0 }
 0x275   :  { %v522_v45 = vadd.f32 %v521_v44, %v359_v27  ;;  %v545_v48 = vmax.f32 %v519_v40, 0.0 }
 0x276   :  { %v548_v47 = vmax.f32 %v530_v43, 0.0 }
 0x277   :  { %v546_v49 = vmax.f32 %v522_v45, 0.0  ;;  %734 = vmatpush3.bf16.msra.mxu0 %v556_v33 }
 0x278   :  { %v558_v50 = vpack.c.bf16 %v548_v47, %v547_v46  ;;  %735 = vmatprep.subr.bf16.mxu0 %v789_v42 }
 0x279   :  { %v557_v51 = vpack.c.bf16 %v546_v49, %v545_v48 }
 0x27b   :  { %736 = vmatpush3.bf16.msra.mxu0 %v557_v51 }
 0x27c   :  { %737 = vmatprep.subr.bf16.mxu0 %v789_v42 }
 0x27f   :  { %738 = vmatpush3.bf16.msra.mxu0 %v558_v50 }
 0x282   :  { %740 = vmatmul.mubr.bf16.vlgmr.msra.gmra.mrb[8].mxu0 %v763_v52 }
 0x355   :  { %v609_v54 = vpop.f32.mrb[8].mxu0 }
 0x356   :  { %v610_v55 = vadd.f32 %v609_v54, %v562_v53  ;;  %v741_v56 = vpop.f32.mrb[9].mxu0 }
 0x357   :  { %v612_v58 = vpop.f32.mrb[10].mxu0 }
 0x358   :  { %616 = vst [vmem:[#allocation2] sm:$0xff] %v610_v55  ;;  %v613_v59 = vadd.f32 %v612_v58, %v567_v57  ;;  %v742_v60 = vpop.f32.mrb[11].mxu0 }
 0x35a   :  { %617 = vst [vmem:[#allocation2 + $0x8] sm:$0xff] %v613_v59 }
 0x35b   :  { %775 = shalt.err (!%p772_p4)
}
 0x35c   :  { %s776_s14 = scalar_lea.hbm %s1006_s5, 256 }
 0x35d   :  { %p777_p5 = scmp.ne.s32.totalorder %s1006_s5, %s776_s14  ;;  %p780_p6 = scmp.lt.u32.totalorder %s776_s14, %s1006_s5 }
 0x35f   :  { %p782_p7 = pnand %p780_p6, %p777_p5 }
 0x361   :  { %785 = shalt.err (!%p782_p7)
}
 0x362   :  { %s792_s17 = smov 128   ;;  %s793_s18 = smov 8  }
 0x363   :  { %629 = dma.vmem_to_hbm [thread:$0]  %s624_s11, 256, %s1006_s5, [#allocation3], %s792_s17, %s792_s17, %s793_s18  }
 0x364   :  { %786 = dma.done.wait [#allocation3], 256  }
 0x365   :  { %787 = vsyncadd [#allocation3], 4294967040 }
 0x366   :  { %633 = vsyncpa [#allocation3], 1 }

</bundles_post_ra>
